<compile_context>
chip_gen: v5e
topology: v5e:2x2
jax: 0.10.0
libtpu: 0.0.40
codegen_flags: <defaults>
</compile_context>

<pallas_src>
import jax
import jax.numpy as jnp
from jax.experimental import pallas as pl
from jax.experimental.pallas import tpu as pltpu

SIGMA_DATA = 0.5
P_MEAN = -1.2
P_STD = 1.2
LOSS_TYPE = "l2"            # module default ('l2'); 'l1' supported in-kernel
OFFSET_NOISE_LEVEL = 0.0    # module default (offset-noise branch not taken)

_LANE = 128
_VMEM_LIMIT = 64 * 1024 * 1024


# ----------------------------- tiling helpers --------------------------------

def _largest_divisor_leq(n, cap):
    for d in range(min(n, cap), 0, -1):
        if n % d == 0:
            return d
    return n


def _choose_chunk(S, cap=512):
    """Sublane-dense chunk of the S axis: multiple of 8 dividing S, else full."""
    if S <= cap:
        return S
    start = cap - (cap % 8)
    for d in range(start, 7, -8):
        if S % d == 0:
            return d
    return S  # full extent is always layout-legal


# ----------------------- Pallas kernels (hot path) ----------------------------

def _noise_cin_kernel(sigma_ref, cin_ref, x_ref, n_ref, noised_ref, scaled_ref):
    """noised = x + noise * sigma[b];  scaled = noised * c_in[b]  (fused)."""
    # Compute in f32; for bf16 inputs on v6e/v7x this could stay bf16, but f32
    # keeps v5e on its native VPU path and matches the reference exactly.
    x = x_ref[...].astype(jnp.float32)
    n = n_ref[...].astype(jnp.float32)
    noised = x + n * sigma_ref[...]                 # (Bt,1,1) bcast over (Bt,St,128)
    noised_ref[...] = noised.astype(noised_ref.dtype)
    scaled_ref[...] = (noised * cin_ref[...]).astype(scaled_ref.dtype)


def get_noised_and_scaled_pallas(x, noise, sigmas, c_in):
    B, C, H, W = x.shape
    D = C * H * W
    # TODO(synk): D not a multiple of 128 would need a padded view; standard
    # diffusion latent/pixel shapes satisfy this.
    assert D % _LANE == 0, D
    S = D // _LANE
    Bt = _largest_divisor_leq(B, 8)
    St = _choose_chunk(S)

    x3 = x.reshape(B, S, _LANE)
    n3 = noise.reshape(B, S, _LANE)
    sig = sigmas.reshape(B, 1, 1).astype(jnp.float32)
    cin = c_in.reshape(B, 1, 1).astype(jnp.float32)

    scal_spec = pl.BlockSpec((Bt, 1, 1), lambda b, s: (b, 0, 0))
    tens_spec = pl.BlockSpec((Bt, St, _LANE), lambda b, s: (b, s, 0))

    noised, scaled = pl.pallas_call(
        _noise_cin_kernel,
        out_shape=(jax.ShapeDtypeStruct((B, S, _LANE), x.dtype),
                   jax.ShapeDtypeStruct((B, S, _LANE), x.dtype)),
        grid=(B // Bt, S // St),
        in_specs=[scal_spec, scal_spec, tens_spec, tens_spec],
        out_specs=(tens_spec, tens_spec),
        compiler_params=pltpu.CompilerParams(
            dimension_semantics=("parallel", "parallel"),
            vmem_limit_bytes=_VMEM_LIMIT),
    )(sig, cin, x3, n3)
    return noised.reshape(B, C, H, W), scaled.reshape(B, C, H, W)


def _combine_loss_kernel(cskip_ref, cout_ref, wd_ref, net_ref, noised_ref,
                         x_ref, model_out_ref, loss_ref, acc_ref):
    """Fused: model_out = net*c_out + noised*c_skip ; loss[b] = (w/D)*sum(diff^2)."""
    s = pl.program_id(1)

    @pl.when(s == 0)
    def _():
        acc_ref[...] = jnp.zeros_like(acc_ref)

    net = net_ref[...].astype(jnp.float32)
    noised = noised_ref[...].astype(jnp.float32)
    tgt = x_ref[...].astype(jnp.float32)

    model_out = net * cout_ref[...] + noised * cskip_ref[...]
    model_out_ref[...] = model_out.astype(model_out_ref.dtype)

    diff = model_out - tgt
    if LOSS_TYPE == "l2":
        per_elem = diff * diff
    elif LOSS_TYPE == "l1":
        per_elem = jnp.abs(diff)
    else:
        # TODO(synk): 'lpips' needs a pretrained VGG network; no in-kernel equivalent.
        raise NotImplementedError(LOSS_TYPE)

    # partial per-sample sum for this chunk: (Bt, St, 128) -> (Bt, 128)
    acc_ref[...] += jnp.sum(per_elem, axis=1)

    @pl.when(s == pl.num_programs(1) - 1)
    def _():
        total = jnp.sum(acc_ref[...], axis=1, keepdims=True)   # (Bt, 1)
        wd = wd_ref[...][:, :, 0]                               # (Bt, 1)  == w[b]/D
        loss = (wd * total)[:, :, None]                         # (Bt, 1, 1)
        loss_ref[...] = pl.broadcast_to(loss, loss_ref.shape)   # lane-dense store


def combine_and_loss_pallas(net_out, noised_input, x, c_skip, c_out, w):
    B, C, H, W = x.shape
    D = C * H * W
    assert D % _LANE == 0, D
    S = D // _LANE
    Bt = _largest_divisor_leq(B, 8)
    St = _choose_chunk(S)

    net3 = net_out.reshape(B, S, _LANE)
    noi3 = noised_input.reshape(B, S, _LANE)
    x3 = x.reshape(B, S, _LANE)
    cs = c_skip.reshape(B, 1, 1).astype(jnp.float32)
    co = c_out.reshape(B, 1, 1).astype(jnp.float32)
    wd = (w / D).reshape(B, 1, 1).astype(jnp.float32)

    scal_spec = pl.BlockSpec((Bt, 1, 1), lambda b, s: (b, 0, 0))
    tens_spec = pl.BlockSpec((Bt, St, _LANE), lambda b, s: (b, s, 0))
    loss_spec = pl.BlockSpec((Bt, 1, _LANE), lambda b, s: (b, 0, 0))

    model_out3, loss_lanes = pl.pallas_call(
        _combine_loss_kernel,
        out_shape=(jax.ShapeDtypeStruct((B, S, _LANE), net_out.dtype),
                   jax.ShapeDtypeStruct((B, 1, _LANE), jnp.float32)),
        grid=(B // Bt, S // St),
        in_specs=[scal_spec, scal_spec, scal_spec, tens_spec, tens_spec, tens_spec],
        out_specs=(tens_spec, loss_spec),
        scratch_shapes=[pltpu.VMEM((Bt, _LANE), jnp.float32)],
        compiler_params=pltpu.CompilerParams(
            dimension_semantics=("parallel", "arbitrary"),
            vmem_limit_bytes=_VMEM_LIMIT),
    )(cs, co, wd, net3, noi3, x3)

    loss = loss_lanes[:, 0, 0]
    return loss, model_out3.reshape(B, C, H, W)


# ------------------- deterministic stand-ins (plain JAX glue) -----------------

def make_network_params(C):
    # Deterministic 1x1-conv ("channel mixing") weights for the toy network.
    w = jnp.arange(C * C, dtype=jnp.float32).reshape(C, C)
    w = (w / (C * C) - 0.5) * 0.2
    b = jnp.linspace(-0.1, 0.1, C, dtype=jnp.float32)
    return w, b


def toy_network(params, x, c_noise):
    # TODO(synk): the real `network` (UNet) is an external module passed into
    # forward(); a deterministic 1x1-conv stand-in is used here.
    w, b = params
    y = jnp.einsum("bchw,dc->bdhw", x, w) + b[None, :, None, None]
    return y + 0.1 * jnp.tanh(c_noise)[:, None, None, None]


def edm_scalings(sigmas):
    c_skip = SIGMA_DATA ** 2 / (sigmas ** 2 + SIGMA_DATA ** 2)
    c_out = sigmas * SIGMA_DATA / jnp.sqrt(sigmas ** 2 + SIGMA_DATA ** 2)
    c_in = 1.0 / jnp.sqrt(sigmas ** 2 + SIGMA_DATA ** 2)
    c_noise = 0.25 * jnp.log(sigmas)
    return c_skip, c_out, c_in, c_noise


def edm_denoiser(network, params, noised_input, sigmas):
    c_skip, c_out, c_in, c_noise = edm_scalings(sigmas)
    s = lambda a: a[:, None, None, None]
    return (network(params, noised_input * s(c_in), c_noise) * s(c_out)
            + noised_input * s(c_skip))


def edm_sigma_sampler(key, n):
    return jnp.exp(P_MEAN + P_STD * jax.random.normal(key, (n,), jnp.float32))


def edm_loss_weighting(sigmas):
    return (sigmas ** 2 + SIGMA_DATA ** 2) / (sigmas * SIGMA_DATA) ** 2


# ------------------------------ module forward --------------------------------

def standard_diffusion_loss_forward(params, x, key):
    """Mirrors StandardDiffusionLoss._forward (loss_type='l2',
    offset_noise_level=0.0, empty cond)."""
    # TODO(synk): conditioner / batch2model_keys plumbing omitted — external
    # modules with no tensor compute inside this loss module.
    B = x.shape[0]
    k_sigma, k_noise = jax.random.split(key)
    sigmas = edm_sigma_sampler(k_sigma, B)                     # sigma_sampler(B)
    noise = jax.random.normal(k_noise, x.shape, x.dtype)       # randn_like(input)
    c_skip, c_out, c_in, c_noise = edm_scalings(sigmas)        # per-sample scalars

    # Kernel A: noised_input AND noised_input * c_in in one HBM pass.
    noised_input, scaled_input = get_noised_and_scaled_pallas(x, noise, sigmas, c_in)

    # External network stand-in (the denoiser's inner call).
    net_out = toy_network(params, scaled_input, c_noise)

    # Kernel B: fused denoiser combine + weighted-MSE reduction.
    w = edm_loss_weighting(sigmas)
    loss, model_output = combine_and_loss_pallas(net_out, noised_input, x,
                                                 c_skip, c_out, w)
    return loss, {"noised_input": noised_input, "sigmas": sigmas,
                  "noise": noise, "model_output": model_output}


def reference_forward(params, x, key):
    """Pure-JAX reference of the same computation (for verification)."""
    B = x.shape[0]
    k_sigma, k_noise = jax.random.split(key)
    sigmas = edm_sigma_sampler(k_sigma, B)
    noise = jax.random.normal(k_noise, x.shape, x.dtype)
    noised_input = x + noise * sigmas[:, None, None, None]
    model_output = edm_denoiser(toy_network, params, noised_input, sigmas)
    w = edm_loss_weighting(sigmas)[:, None, None, None]
    loss = jnp.mean((w * (model_output - x) ** 2).reshape(B, -1), axis=1)
    return loss, model_output


if __name__ == "__main__":
    B, C, H, W = 2, 4, 16, 16
    key = jax.random.PRNGKey(0)
    k_input, k_fwd = jax.random.split(key)
    x = jax.random.normal(k_input, (B, C, H, W), jnp.float32)
    params = make_network_params(C)

    loss, aux = standard_diffusion_loss_forward(params, x, k_fwd)
    loss = jax.block_until_ready(loss)

    loss_ref, model_out_ref = reference_forward(params, x, k_fwd)
    loss_ref = jax.block_until_ready(loss_ref)

    assert loss.shape == (B,)
    assert jnp.allclose(loss, loss_ref, rtol=1e-4, atol=1e-6), (loss, loss_ref)
    assert jnp.allclose(aux["model_output"], model_out_ref, rtol=1e-4, atol=1e-5)
    print("KERNEL_OK")
</pallas_src>

<mosaic_0001>
module attributes {stable_mosaic.version = 11 : i64} {
  func.func @_noise_cin_kernel(%arg0: i32, %arg1: i32, %arg2: memref<2x1x1xf32, #tpu.memory_space<vmem>>, %arg3: memref<2x1x1xf32, #tpu.memory_space<vmem>>, %arg4: memref<2x8x128xf32, #tpu.memory_space<vmem>>, %arg5: memref<2x8x128xf32, #tpu.memory_space<vmem>>, %arg6: memref<2x8x128xf32, #tpu.memory_space<vmem>>, %arg7: memref<2x8x128xf32, #tpu.memory_space<vmem>>) attributes {dimension_semantics = [#tpu.dimension_semantics<parallel>, #tpu.dimension_semantics<parallel>], iteration_bounds = array<i64: 1, 1>, scalar_prefetch = 0 : i64, scratch_operands = 0 : i64, tpu.core_type = #tpu.core_type<tc>, window_params = [{transform_indices = @transform_0, window_bounds = array<i64: 2, 1, 1>}, {transform_indices = @transform_1, window_bounds = array<i64: 2, 1, 1>}, {transform_indices = @transform_2, window_bounds = array<i64: 2, 8, 128>}, {transform_indices = @transform_3, window_bounds = array<i64: 2, 8, 128>}, {transform_indices = @transform_4, window_bounds = array<i64: 2, 8, 128>}, {transform_indices = @transform_5, window_bounds = array<i64: 2, 8, 128>}]} {
    %c0 = arith.constant 0 : index
    %c0_0 = arith.constant 0 : index
    %c0_1 = arith.constant 0 : index
    %0 = vector.load %arg4[%c0, %c0_0, %c0_1] : memref<2x8x128xf32, #tpu.memory_space<vmem>>, vector<2x8x128xf32>
    %c0_2 = arith.constant 0 : index
    %c0_3 = arith.constant 0 : index
    %c0_4 = arith.constant 0 : index
    %1 = vector.load %arg5[%c0_2, %c0_3, %c0_4] : memref<2x8x128xf32, #tpu.memory_space<vmem>>, vector<2x8x128xf32>
    %c0_5 = arith.constant 0 : index
    %c0_6 = arith.constant 0 : index
    %c0_7 = arith.constant 0 : index
    %2 = vector.load %arg2[%c0_5, %c0_6, %c0_7] : memref<2x1x1xf32, #tpu.memory_space<vmem>>, vector<2x1x1xf32>
    %3 = vector.broadcast %2 : vector<2x1x1xf32> to vector<2x8x128xf32>
    %4 = arith.mulf %1, %3 : vector<2x8x128xf32>
    %5 = arith.addf %0, %4 : vector<2x8x128xf32>
    %c0_8 = arith.constant 0 : index
    %c0_9 = arith.constant 0 : index
    %c0_10 = arith.constant 0 : index
    %6 = vector.load %arg6[%c0_8, %c0_9, %c0_10] : memref<2x8x128xf32, #tpu.memory_space<vmem>>, vector<2x8x128xf32>
    tpu.vector_store %arg6[%c0_8, %c0_9, %c0_10], %5 {strides = array<i32>} : memref<2x8x128xf32, #tpu.memory_space<vmem>>, vector<2x8x128xf32>,
    %c0_11 = arith.constant 0 : index
    %c0_12 = arith.constant 0 : index
    %c0_13 = arith.constant 0 : index
    %7 = vector.load %arg3[%c0_11, %c0_12, %c0_13] : memref<2x1x1xf32, #tpu.memory_space<vmem>>, vector<2x1x1xf32>
    %8 = vector.broadcast %7 : vector<2x1x1xf32> to vector<2x8x128xf32>
    %9 = arith.mulf %5, %8 : vector<2x8x128xf32>
    %c0_14 = arith.constant 0 : index
    %c0_15 = arith.constant 0 : index
    %c0_16 = arith.constant 0 : index
    %10 = vector.load %arg7[%c0_14, %c0_15, %c0_16] : memref<2x8x128xf32, #tpu.memory_space<vmem>>, vector<2x8x128xf32>
    tpu.vector_store %arg7[%c0_14, %c0_15, %c0_16], %9 {strides = array<i32>} : memref<2x8x128xf32, #tpu.memory_space<vmem>>, vector<2x8x128xf32>,
    return
  }
  func.func @transform_0(%arg0: i32, %arg1: i32) -> (i32, i32, i32) {
    %c0_i32 = arith.constant 0 : i32
    %c0_i32_0 = arith.constant 0 : i32
    %c0_i32_1 = arith.constant 0 : i32
    return %arg0, %c0_i32, %c0_i32_0 : i32, i32, i32
  }
  func.func @transform_1(%arg0: i32, %arg1: i32) -> (i32, i32, i32) {
    %c0_i32 = arith.constant 0 : i32
    %c0_i32_0 = arith.constant 0 : i32
    %c0_i32_1 = arith.constant 0 : i32
    return %arg0, %c0_i32, %c0_i32_0 : i32, i32, i32
  }
  func.func @transform_2(%arg0: i32, %arg1: i32) -> (i32, i32, i32) {
    %c0_i32 = arith.constant 0 : i32
    %c0_i32_0 = arith.constant 0 : i32
    return %arg0, %arg1, %c0_i32 : i32, i32, i32
  }
  func.func @transform_3(%arg0: i32, %arg1: i32) -> (i32, i32, i32) {
    %c0_i32 = arith.constant 0 : i32
    %c0_i32_0 = arith.constant 0 : i32
    return %arg0, %arg1, %c0_i32 : i32, i32, i32
  }
  func.func @transform_4(%arg0: i32, %arg1: i32) -> (i32, i32, i32) {
    %c0_i32 = arith.constant 0 : i32
    %c0_i32_0 = arith.constant 0 : i32
    return %arg0, %arg1, %c0_i32 : i32, i32, i32
  }
  func.func @transform_5(%arg0: i32, %arg1: i32) -> (i32, i32, i32) {
    %c0_i32 = arith.constant 0 : i32
    %c0_i32_0 = arith.constant 0 : i32
    return %arg0, %arg1, %c0_i32 : i32, i32, i32
  }
}

</mosaic_0001>

<bundles_post_ra>
// kernel: tpu_custom_call.1
= control target key start
LH: loop header
LB: loop body
LE: loop exit
PB: predicated region body
PF: predicated region fallthrough
CT: control target
= control target key end

     0   :  { %11 = vsyncpa [#allocation3], 0  ;;  %s323_s0 = inlined_call_operand.vmem [shape: f32[2,1,1], index: 0, kind: input, shape index: {}]   ;;  %s324_s1 = inlined_call_operand.vmem [shape: f32[2,1,1], index: 1, kind: input, shape index: {}]   ;;  %s325_s2 = inlined_call_operand.hbm [shape: f32[2,8,128], index: 2, kind: input, shape index: {}]   ;;  %s326_s3 = inlined_call_operand.hbm [shape: f32[2,8,128], index: 3, kind: input, shape index: {}]   ;;  %s327_s4 = inlined_call_operand.hbm [shape: f32[2,8,128], index: 4, kind: output, shape index: {0}]   ;;  %s328_s5 = inlined_call_operand.hbm [shape: f32[2,8,128], index: 5, kind: output, shape index: {1}]  }
   0x1   :  { %12 = vsyncpa [#allocation6], 0 }
   0x2   :  { %13 = vsyncpa [#allocation4], 0 }
   0x3   :  { %14 = vsyncpa [#allocation9], 0  ;;  %s23_s20 = sshll.u32 %s325_s2, 4  ;;  %s250_s21 = smov [#allocation2]   ;;  %s24_s20 = int_to_ptr.hbm [resolvable:$true] %s23_s20 }
   0x4   :  { %s25_s22 = sshll.u32 %s250_s21, 4  ;;  %s36_s25 = sshll.u32 %s326_s3, 4  ;;  %s26_s22 = int_to_ptr.vmem [resolvable:$true] %s25_s22  ;;  %s37_s25 = int_to_ptr.hbm [resolvable:$true] %s36_s25 }
   0x5   :  { %s251_s26 = smov 128   ;;  %s252_s27 = smov 8  }
   0x6   :  { %31 = dma.hbm_to_vmem [thread:$0]  %s24_s20, 256, %s26_s22, [#allocation3], %s251_s26, %s251_s26, %s252_s27  }
   0x7   :  { %s253_s28 = smov [#allocation5]  }
   0x8   :  { %s38_s29 = sshll.u32 %s253_s28, 4  ;;  %s39_s29 = int_to_ptr.vmem [resolvable:$true] %s38_s29 }
   0x9   :  { %44 = dma.hbm_to_vmem [thread:$0]  %s37_s25, 256, %s39_s29, [#allocation6], %s251_s26, %s251_s26, %s252_s27  }
   0xa   :  { %242 = dma.done.wait [#allocation3], 256  }
   0xb   :  { %243 = vsyncadd [#allocation3], 4294967040 }
   0xc   :  { %244 = dma.done.wait [#allocation6], 256  }
   0xd   :  { %245 = vsyncadd [#allocation6], 4294967040  ;;  %v254_v0 = vmov 0   ;;  %v142_v1 = vld [vmem:[%s324_s1] ss:$0 sm:$0xff]  ;;  %v55_v5 = vld [vmem:[#allocation5] sm:$0xff] }
   0xe   :  { %141 = vset.pattern.permute.xlu1 %v254_v0  ;;  %140 = vset.pattern.permute.xlu0 %v254_v0  ;;  %v143_v2 = vld [vmem:[%s323_s0] ss:$0 sm:$0xff]  ;;  %v144_v3 = vld [vmem:[%s324_s1 + $0x1] ss:$0 sm:$0xff]  ;;  %v56_v12 = vld [vmem:[#allocation5 + $0x8] sm:$0xff]  ;;  %s255_s11 = smov [#allocation7]  }
   0xf   :  { %84 = vperm.xlu1 %141, %v142_v1   ;;  %64 = vperm.xlu0 %140, %v143_v2   ;;  %v145_v4 = vld [vmem:[%s323_s0 + $0x1] ss:$0 sm:$0xff]  ;;  %v54_v14 = vld [vmem:[#allocation2 + $0x8] sm:$0xff]  ;;  %s99_s1 = sshll.u32 %s255_s11, 4  ;;  %s101_s0 = sshll.u32 %s327_s4, 4  ;;  %s100_s1 = int_to_ptr.vmem [resolvable:$true] %s99_s1  ;;  %s102_s0 = int_to_ptr.hbm [resolvable:$true] %s101_s0 }
  0x10   :  { %v53_v7 = vld [vmem:[#allocation2] sm:$0xff]  ;;  %s256_s14 = smov [#allocation8]   ;;  %s114_s18 = sshll.u32 %s328_s5, 4  ;;  %s115_s18 = int_to_ptr.hbm [resolvable:$true] %s114_s18 }
  0x11   :  { %s112_s15 = sshll.u32 %s256_s14, 4  ;;  %s113_s15 = int_to_ptr.vmem [resolvable:$true] %s112_s15 }
  0x17   :  { %88 = vperm.xlu1 %141, %v144_v3   ;;  %68 = vperm.xlu0 %140, %v145_v4  }
  0x81   :  { %v65_v6 = vpop.permute.xlu0 %64  ;;  %v85_v9 = vpop.permute.xlu1 %84 }
  0x82   :  { %v71_v8 = vmul.f32 %v65_v6, %v55_v5 }
  0x84   :  { %v73_v10 = vadd.f32 %v71_v8, %v53_v7 }
  0x86   :  { %75 = vst [vmem:[#allocation7] sm:$0xff] %v73_v10  ;;  %v91_v11 = vmul.f32 %v85_v9, %v73_v10 }
  0x88   :  { %93 = vst [vmem:[#allocation8] sm:$0xff] %v91_v11 }
  0x89   :  { %v69_v13 = vpop.permute.xlu0 %68  ;;  %v89_v17 = vpop.permute.xlu1 %88 }
  0x8a   :  { %v72_v15 = vmul.f32 %v69_v13, %v56_v12 }
  0x8c   :  { %v74_v16 = vadd.f32 %v72_v15, %v54_v14 }
  0x8e   :  { %76 = vst [vmem:[#allocation7 + $0x8] sm:$0xff] %v74_v16  ;;  %v92_v18 = vmul.f32 %v89_v17, %v74_v16 }
  0x8f   :  { %107 = dma.vmem_to_hbm [thread:$0]  %s100_s1, 256, %s102_s0, [#allocation4], %s251_s26, %s251_s26, %s252_s27  }
  0x90   :  { %94 = vst [vmem:[#allocation8 + $0x8] sm:$0xff] %v92_v18 }
  0x91   :  { %120 = dma.vmem_to_hbm [thread:$0]  %s113_s15, 256, %s115_s18, [#allocation9], %s251_s26, %s251_s26, %s252_s27  }
  0x92   :  { %246 = dma.done.wait [#allocation4], 256  }
  0x93   :  { %247 = vsyncadd [#allocation4], 4294967040 }
  0x94   :  { %248 = dma.done.wait [#allocation9], 256  }
  0x95   :  { %249 = vsyncadd [#allocation9], 4294967040 }
  0x96   :  { %129 = vsyncpa [#allocation3], 1 }
  0x97   :  { %130 = vsyncpa [#allocation6], 1 }
  0x98   :  { %131 = vsyncpa [#allocation4], 1 }
  0x99   :  { %132 = vsyncpa [#allocation9], 1 }

</bundles_post_ra>
